<compile_context>
chip_gen: v7x
topology: tpu7x:2x2x1
jax: 0.10.0
libtpu: 0.0.40
codegen_flags: <defaults>
</compile_context>

<pallas_src>
import functools

import jax
import jax.numpy as jnp
import numpy as np
from jax.experimental import pallas as pl
from jax.experimental.pallas import tpu as pltpu


def _round_up(x, m):
    return (x + m - 1) // m * m


def mlp_kernel(x_ref, w1_ref, b1_ref, w2_ref, b2_ref, w3_ref, b3_ref,
               o_ref, h1_ref, acc_ref):
    """Grid = (rows, hidden-column tiles of layer 2).

    j == 0      : compute h1 = relu(x @ w1 + b1) once per row-tile, cache it in
                  VMEM (compute dtype), zero the f32 output accumulator.
    every j     : h2_j = relu(h1 @ w2[:, j] + b2[j]);  acc += h2_j @ w3[j, :]
    j == last   : o = acc + b3  (bias add + cast in f32, lane-dense store).
    """
    j = pl.program_id(1)

    @pl.when(j == 0)
    def _init():
        h1 = jnp.dot(x_ref[...], w1_ref[...],
                     preferred_element_type=jnp.float32)
        h1 = jnp.maximum(h1 + b1_ref[...], 0.0)          # bias + ReLU in f32
        h1_ref[...] = h1.astype(h1_ref.dtype)            # cache for all j
        acc_ref[...] = jnp.zeros_like(acc_ref)

    h2 = jnp.dot(h1_ref[...], w2_ref[...], preferred_element_type=jnp.float32)
    h2 = jnp.maximum(h2 + b2_ref[...], 0.0)
    acc_ref[...] += jnp.dot(h2.astype(w3_ref.dtype), w3_ref[...],
                            preferred_element_type=jnp.float32)

    @pl.when(j == pl.num_programs(1) - 1)
    def _finalize():
        o_ref[...] = (acc_ref[...] + b3_ref[...]).astype(o_ref.dtype)


def transformer_mlp(x, params, *, tile_m=256, tile_h=512,
                    compute_dtype=jnp.float32,
                    single_buffer_resident_weights=False):
    """x: (B, T, D) float32.  params: dict of w1,b1,w2,b2,w3,b3 (f32, (in,out))."""
    assert tile_m % 16 == 0 and tile_h % 128 == 0
    B, T, D = x.shape
    H = params["w1"].shape[1]                      # 4 * D
    M = B * T

    # Lane-dense padded sizes (multiples of 128 on the lane axis).
    d_pad = _round_up(D, 128)
    tile_h2 = min(tile_h, _round_up(H, 128))       # hidden-column tile (>=128)
    h_pad = _round_up(H, tile_h2)
    m_pad = _round_up(M, tile_m)

    out_dtype = x.dtype
    csize = jnp.dtype(compute_dtype).itemsize

    # Zero-pad (padding rows/cols contribute exact zeros through the MLP).
    x2d = jnp.pad(x.reshape(M, D), ((0, m_pad - M), (0, d_pad - D)))
    w1 = jnp.pad(params["w1"], ((0, d_pad - D), (0, h_pad - H)))
    b1 = jnp.pad(params["b1"], ((0, 0), (0, h_pad - H)))
    w2 = jnp.pad(params["w2"], ((0, h_pad - H), (0, h_pad - H)))
    b2 = jnp.pad(params["b2"], ((0, 0), (0, h_pad - H)))
    w3 = jnp.pad(params["w3"], ((0, h_pad - H), (0, d_pad - D)))
    b3 = jnp.pad(params["b3"], ((0, 0), (0, d_pad - D)))

    # MXU inputs in compute dtype (bf16 recommended at production shapes);
    # biases stay f32 -> bias/ReLU math happens post-accumulation in f32.
    x2d = x2d.astype(compute_dtype)
    w1 = w1.astype(compute_dtype)
    w2 = w2.astype(compute_dtype)
    w3 = w3.astype(compute_dtype)

    grid = (m_pad // tile_m, h_pad // tile_h2)     # (rows, hidden tiles)

    # Grid-invariant blocks don't need a second pipeline buffer; keeping this
    # optional since it only matters for VMEM headroom at production shapes.
    resident_mode = (pl.Buffered(1) if single_buffer_resident_weights else None)

    in_specs = [
        pl.BlockSpec((tile_m, d_pad), lambda i, j: (i, 0)),                      # x
        pl.BlockSpec((d_pad, h_pad), lambda i, j: (0, 0),
                     pipeline_mode=resident_mode),                               # w1
        pl.BlockSpec((1, h_pad), lambda i, j: (0, 0),
                     pipeline_mode=resident_mode),                               # b1
        pl.BlockSpec((h_pad, tile_h2), lambda i, j: (0, j)),                     # w2 cols
        pl.BlockSpec((1, tile_h2), lambda i, j: (0, j)),                         # b2
        pl.BlockSpec((tile_h2, d_pad), lambda i, j: (j, 0)),                     # w3 rows
        pl.BlockSpec((1, d_pad), lambda i, j: (0, 0),
                     pipeline_mode=resident_mode),                               # b3
    ]
    out_spec = pl.BlockSpec((tile_m, d_pad), lambda i, j: (i, 0))

    scratch_shapes = [
        pltpu.VMEM((tile_m, h_pad), compute_dtype),    # cached h1
        pltpu.VMEM((tile_m, d_pad), jnp.float32),      # output accumulator
    ]

    # Explicit VMEM budget: x/out tiles + weight blocks (double-buffered) +
    # scratches + live h2 temp, with 2x headroom, capped at v7x physical 64 MiB.
    wbuf = 1 if single_buffer_resident_weights else 2
    est = (
        2 * tile_m * d_pad * (csize + jnp.dtype(out_dtype).itemsize)
        + wbuf * (d_pad * h_pad * csize + h_pad * 4 + d_pad * 4)
        + 2 * (h_pad * tile_h2 * csize + tile_h2 * 4)
        + 2 * (tile_h2 * d_pad * csize)
        + tile_m * h_pad * csize + tile_m * d_pad * 4
        + 2 * tile_m * tile_h2 * 4
    )
    vmem_limit = int(min(64 * 1024 * 1024, max(32 * 1024 * 1024, 2 * est)))

    flops = 2 * m_pad * (d_pad * h_pad + h_pad * h_pad + h_pad * d_pad)
    bytes_accessed = int(
        x2d.size * csize + (w1.size + w2.size + w3.size) * csize
        + (b1.size + b2.size + b3.size) * 4
        + m_pad * d_pad * jnp.dtype(out_dtype).itemsize)

    out2d = pl.pallas_call(
        mlp_kernel,
        out_shape=jax.ShapeDtypeStruct((m_pad, d_pad), out_dtype),
        grid_spec=pltpu.PrefetchScalarGridSpec(
            num_scalar_prefetch=0,
            grid=grid,
            in_specs=in_specs,
            out_specs=out_spec,
            scratch_shapes=scratch_shapes,
        ),
        compiler_params=pltpu.CompilerParams(
            dimension_semantics=("parallel", "arbitrary"),
            vmem_limit_bytes=vmem_limit,
        ),
        cost_estimate=pl.CostEstimate(flops=flops, transcendentals=0,
                                      bytes_accessed=bytes_accessed),
    )(x2d, w1, b1, w2, b2, w3, b3)

    return out2d[:M, :D].reshape(B, T, D)


def init_params(key, embed_dim):
    """Deterministic init.  Weights stored (in, out); matches PyTorch Linear
    semantics y = x @ W.T + b with W kept pre-transposed."""
    H = 4 * embed_dim
    k1, k2, k3, k4, k5, k6 = jax.random.split(key, 6)
    scale1 = 1.0 / np.sqrt(embed_dim)
    scale2 = 1.0 / np.sqrt(H)
    return {
        "w1": jax.random.uniform(k1, (embed_dim, H), jnp.float32, -scale1, scale1),
        "b1": jax.random.uniform(k2, (1, H), jnp.float32, -scale1, scale1),
        "w2": jax.random.uniform(k3, (H, H), jnp.float32, -scale2, scale2),
        "b2": jax.random.uniform(k4, (1, H), jnp.float32, -scale2, scale2),
        "w3": jax.random.uniform(k5, (H, embed_dim), jnp.float32, -scale2, scale2),
        "b3": jax.random.uniform(k6, (1, embed_dim), jnp.float32, -scale2, scale2),
    }


def reference_mlp(x, params):
    B, T, D = x.shape
    x2d = x.reshape(B * T, D)
    h1 = jnp.maximum(x2d @ params["w1"] + params["b1"], 0.0)
    h2 = jnp.maximum(h1 @ params["w2"] + params["b2"], 0.0)
    y = h2 @ params["w3"] + params["b3"]
    return y.reshape(B, T, D)


if __name__ == "__main__":
    B, T, embed_dim = 2, 8, 32           # small transformer-ish shapes
    key = jax.random.PRNGKey(0)
    kx, kp = jax.random.split(key)
    x = jax.random.normal(kx, (B, T, embed_dim), dtype=jnp.float32)
    params = init_params(kp, embed_dim)

    ref = reference_mlp(x, params)

    # f32 compute path: exact parity with the module (eval-mode dropout).
    out = transformer_mlp(x, params, compute_dtype=jnp.float32)
    out = jax.block_until_ready(out)
    np.testing.assert_allclose(np.asarray(out), np.asarray(ref),
                               rtol=1e-5, atol=1e-5)

    # bf16 compute path (recommended at production shapes: ~2x MXU throughput,
    # half the weight HBM/VMEM traffic); f32 accumulation, loose tolerance.
    out_bf16 = transformer_mlp(x, params, compute_dtype=jnp.bfloat16)
    out_bf16 = jax.block_until_ready(out_bf16)
    np.testing.assert_allclose(np.asarray(out_bf16), np.asarray(ref),
                               rtol=5e-2, atol=5e-2)

    print("KERNEL_OK")
</pallas_src>

<mosaic_0001>
module attributes {stable_mosaic.version = 11 : i64} {
  func.func @mlp_kernel(%arg0: i32, %arg1: i32, %arg2: memref<256x128xf32, #tpu.memory_space<vmem>>, %arg3: memref<128x128xf32, #tpu.memory_space<vmem>>, %arg4: memref<1x128xf32, #tpu.memory_space<vmem>>, %arg5: memref<128x128xf32, #tpu.memory_space<vmem>>, %arg6: memref<1x128xf32, #tpu.memory_space<vmem>>, %arg7: memref<128x128xf32, #tpu.memory_space<vmem>>, %arg8: memref<1x128xf32, #tpu.memory_space<vmem>>, %arg9: memref<256x128xf32, #tpu.memory_space<vmem>>, %arg10: memref<256x128xf32, #tpu.memory_space<vmem>>, %arg11: memref<256x128xf32, #tpu.memory_space<vmem>>) attributes {dimension_semantics = [#tpu.dimension_semantics<parallel>, #tpu.dimension_semantics<arbitrary>], iteration_bounds = array<i64: 1, 1>, scalar_prefetch = 0 : i64, scratch_operands = 2 : i64, tpu.core_type = #tpu.core_type<tc>, window_params = [{transform_indices = @transform_0, window_bounds = array<i64: 256, 128>}, {pipeline_mode = #tpu.pipeline_mode<synchronous>, transform_indices = @transform_1, window_bounds = array<i64: 128, 128>}, {pipeline_mode = #tpu.pipeline_mode<synchronous>, transform_indices = @transform_2, window_bounds = array<i64: 1, 128>}, {transform_indices = @transform_3, window_bounds = array<i64: 128, 128>}, {transform_indices = @transform_4, window_bounds = array<i64: 1, 128>}, {transform_indices = @transform_5, window_bounds = array<i64: 128, 128>}, {pipeline_mode = #tpu.pipeline_mode<synchronous>, transform_indices = @transform_6, window_bounds = array<i64: 1, 128>}, {transform_indices = @transform_7, window_bounds = array<i64: 256, 128>}]} {
    %c0_i32 = arith.constant 0 : i32
    %0 = arith.cmpi eq, %arg1, %c0_i32 : i32
    %1 = arith.extui %0 : i1 to i32
    %c0_i32_0 = arith.constant 0 : i32
    %2 = arith.cmpi ne, %1, %c0_i32_0 : i32
    scf.if %2 {
      %c0_16 = arith.constant 0 : index
      %c0_17 = arith.constant 0 : index
      %19 = vector.load %arg2[%c0_16, %c0_17] : memref<256x128xf32, #tpu.memory_space<vmem>>, vector<256x128xf32>
      %c0_18 = arith.constant 0 : index
      %c0_19 = arith.constant 0 : index
      %20 = vector.load %arg3[%c0_18, %c0_19] : memref<128x128xf32, #tpu.memory_space<vmem>>, vector<128x128xf32>
      %cst_20 = arith.constant dense<0.000000e+00> : vector<256x128xf32>
      %21 = tpu.matmul %19, %20, %cst_20 {dimension_numbers = #tpu.dot_dimension_numbers<[1], [0], [0], [1], [0, 0, 1, 1], [], []>} : vector<256x128xf32>, vector<128x128xf32>, vector<256x128xf32> -> vector<256x128xf32>
      %c0_21 = arith.constant 0 : index
      %c0_22 = arith.constant 0 : index
      %22 = vector.load %arg4[%c0_21, %c0_22] : memref<1x128xf32, #tpu.memory_space<vmem>>, vector<1x128xf32>
      %23 = vector.broadcast %22 : vector<1x128xf32> to vector<256x128xf32>
      %24 = arith.addf %21, %23 : vector<256x128xf32>
      %cst_23 = arith.constant 0.000000e+00 : f32
      %25 = vector.broadcast %cst_23 : f32 to vector<256x128xf32>
      %26 = arith.maximumf %24, %25 : vector<256x128xf32>
      %c0_24 = arith.constant 0 : index
      %c0_25 = arith.constant 0 : index
      %27 = vector.load %arg10[%c0_24, %c0_25] : memref<256x128xf32, #tpu.memory_space<vmem>>, vector<256x128xf32>
      tpu.vector_store %arg10[%c0_24, %c0_25], %26 {strides = array<i32>} : memref<256x128xf32, #tpu.memory_space<vmem>>, vector<256x128xf32>,
      %cst_26 = arith.constant 0.000000e+00 : f32
      %28 = vector.broadcast %cst_26 : f32 to vector<256x128xf32>
      %c0_27 = arith.constant 0 : index
      %c0_28 = arith.constant 0 : index
      %29 = vector.load %arg11[%c0_27, %c0_28] : memref<256x128xf32, #tpu.memory_space<vmem>>, vector<256x128xf32>
      tpu.vector_store %arg11[%c0_27, %c0_28], %28 {strides = array<i32>} : memref<256x128xf32, #tpu.memory_space<vmem>>, vector<256x128xf32>,
    } else {
    }
    %c0 = arith.constant 0 : index
    %c0_1 = arith.constant 0 : index
    %3 = vector.load %arg10[%c0, %c0_1] : memref<256x128xf32, #tpu.memory_space<vmem>>, vector<256x128xf32>
    %c0_2 = arith.constant 0 : index
    %c0_3 = arith.constant 0 : index
    %4 = vector.load %arg5[%c0_2, %c0_3] : memref<128x128xf32, #tpu.memory_space<vmem>>, vector<128x128xf32>
    %cst = arith.constant dense<0.000000e+00> : vector<256x128xf32>
    %5 = tpu.matmul %3, %4, %cst {dimension_numbers = #tpu.dot_dimension_numbers<[1], [0], [0], [1], [0, 0, 1, 1], [], []>} : vector<256x128xf32>, vector<128x128xf32>, vector<256x128xf32> -> vector<256x128xf32>
    %c0_4 = arith.constant 0 : index
    %c0_5 = arith.constant 0 : index
    %6 = vector.load %arg6[%c0_4, %c0_5] : memref<1x128xf32, #tpu.memory_space<vmem>>, vector<1x128xf32>
    %7 = vector.broadcast %6 : vector<1x128xf32> to vector<256x128xf32>
    %8 = arith.addf %5, %7 : vector<256x128xf32>
    %cst_6 = arith.constant 0.000000e+00 : f32
    %9 = vector.broadcast %cst_6 : f32 to vector<256x128xf32>
    %10 = arith.maximumf %8, %9 : vector<256x128xf32>
    %c0_7 = arith.constant 0 : index
    %c0_8 = arith.constant 0 : index
    %11 = vector.load %arg11[%c0_7, %c0_8] : memref<256x128xf32, #tpu.memory_space<vmem>>, vector<256x128xf32>
    %c0_9 = arith.constant 0 : index
    %c0_10 = arith.constant 0 : index
    %12 = vector.load %arg7[%c0_9, %c0_10] : memref<128x128xf32, #tpu.memory_space<vmem>>, vector<128x128xf32>
    %cst_11 = arith.constant dense<0.000000e+00> : vector<256x128xf32>
    %13 = tpu.matmul %10, %12, %cst_11 {dimension_numbers = #tpu.dot_dimension_numbers<[1], [0], [0], [1], [0, 0, 1, 1], [], []>} : vector<256x128xf32>, vector<128x128xf32>, vector<256x128xf32> -> vector<256x128xf32>
    %14 = arith.addf %11, %13 : vector<256x128xf32>
    %c0_12 = arith.constant 0 : index
    %c0_13 = arith.constant 0 : index
    %15 = vector.load %arg11[%c0_12, %c0_13] : memref<256x128xf32, #tpu.memory_space<vmem>>, vector<256x128xf32>
    tpu.vector_store %arg11[%c0_12, %c0_13], %14 {strides = array<i32>} : memref<256x128xf32, #tpu.memory_space<vmem>>, vector<256x128xf32>,
    %c0_i32_14 = arith.constant 0 : i32
    %16 = arith.cmpi eq, %arg1, %c0_i32_14 : i32
    %17 = arith.extui %16 : i1 to i32
    %c0_i32_15 = arith.constant 0 : i32
    %18 = arith.cmpi ne, %17, %c0_i32_15 : i32
    scf.if %18 {
      %c0_16 = arith.constant 0 : index
      %c0_17 = arith.constant 0 : index
      %19 = vector.load %arg11[%c0_16, %c0_17] : memref<256x128xf32, #tpu.memory_space<vmem>>, vector<256x128xf32>
      %c0_18 = arith.constant 0 : index
      %c0_19 = arith.constant 0 : index
      %20 = vector.load %arg8[%c0_18, %c0_19] : memref<1x128xf32, #tpu.memory_space<vmem>>, vector<1x128xf32>
      %21 = vector.broadcast %20 : vector<1x128xf32> to vector<256x128xf32>
      %22 = arith.addf %19, %21 : vector<256x128xf32>
      %c0_20 = arith.constant 0 : index
      %c0_21 = arith.constant 0 : index
      %23 = vector.load %arg9[%c0_20, %c0_21] : memref<256x128xf32, #tpu.memory_space<vmem>>, vector<256x128xf32>
      tpu.vector_store %arg9[%c0_20, %c0_21], %22 {strides = array<i32>} : memref<256x128xf32, #tpu.memory_space<vmem>>, vector<256x128xf32>,
    } else {
    }
    return
  }
  func.func @transform_0(%arg0: i32, %arg1: i32) -> (i32, i32) {
    %c0_i32 = arith.constant 0 : i32
    %c0_i32_0 = arith.constant 0 : i32
    return %arg0, %c0_i32 : i32, i32
  }
  func.func @transform_1(%arg0: i32, %arg1: i32) -> (i32, i32) {
    %c0_i32 = arith.constant 0 : i32
    %c0_i32_0 = arith.constant 0 : i32
    %c0_i32_1 = arith.constant 0 : i32
    return %c0_i32, %c0_i32_0 : i32, i32
  }
  func.func @transform_2(%arg0: i32, %arg1: i32) -> (i32, i32) {
    %c0_i32 = arith.constant 0 : i32
    %c0_i32_0 = arith.constant 0 : i32
    %c0_i32_1 = arith.constant 0 : i32
    return %c0_i32, %c0_i32_0 : i32, i32
  }
  func.func @transform_3(%arg0: i32, %arg1: i32) -> (i32, i32) {
    %c0_i32 = arith.constant 0 : i32
    %c0_i32_0 = arith.constant 0 : i32
    return %c0_i32, %arg1 : i32, i32
  }
  func.func @transform_4(%arg0: i32, %arg1: i32) -> (i32, i32) {
    %c0_i32 = arith.constant 0 : i32
    %c0_i32_0 = arith.constant 0 : i32
    return %c0_i32, %arg1 : i32, i32
  }
  func.func @transform_5(%arg0: i32, %arg1: i32) -> (i32, i32) {
    %c0_i32 = arith.constant 0 : i32
    %c0_i32_0 = arith.constant 0 : i32
    return %arg1, %c0_i32 : i32, i32
  }
  func.func @transform_6(%arg0: i32, %arg1: i32) -> (i32, i32) {
    %c0_i32 = arith.constant 0 : i32
    %c0_i32_0 = arith.constant 0 : i32
    %c0_i32_1 = arith.constant 0 : i32
    return %c0_i32, %c0_i32_0 : i32, i32
  }
  func.func @transform_7(%arg0: i32, %arg1: i32) -> (i32, i32) {
    %c0_i32 = arith.constant 0 : i32
    %c0_i32_0 = arith.constant 0 : i32
    return %arg0, %c0_i32 : i32, i32
  }
}

</mosaic_0001>

<bundles_post_ra>
// kernel: tpu_custom_call.1
= control target key start
LH: loop header
LB: loop body
LE: loop exit
PB: predicated region body
PF: predicated region fallthrough
CT: control target
= control target key end

     0   :  { %12 = vsyncpa [#allocation5], 0  ;;  %s2134_s0 = inlined_call_operand.hbm [shape: f32[256,128], index: 0, kind: input, shape index: {}]   ;;  %s2135_s1 = inlined_call_operand.hbm [shape: f32[128,128], index: 1, kind: input, shape index: {}]   ;;  %s2136_s2 = inlined_call_operand.vmem [shape: f32[1,128], index: 2, kind: input, shape index: {}]   ;;  %s2137_s3 = inlined_call_operand.hbm [shape: f32[128,128], index: 3, kind: input, shape index: {}]   ;;  %s2138_s4 = inlined_call_operand.vmem [shape: f32[1,128], index: 4, kind: input, shape index: {}]   ;;  %s2139_s5 = inlined_call_operand.hbm [shape: f32[128,128], index: 5, kind: input, shape index: {}]   ;;  %s2140_s6 = inlined_call_operand.vmem [shape: f32[1,128], index: 6, kind: input, shape index: {}]   ;;  %s2141_s7 = inlined_call_operand.hbm [shape: f32[256,128], index: 7, kind: output, shape index: {}]  }
   0x1   :  { %13 = vsyncpa [#allocation8], 0 }
   0x2   :  { %14 = vsyncpa [#allocation11], 0 }
   0x3   :  { %15 = vsyncpa [#allocation6], 0  ;;  %s1860_s24 = smov [#allocation7]   ;;  %s1861_s26 = smov [#allocation4]  }
   0x4   :  { %s33_s25 = sshll.u32 %s1860_s24, 4  ;;  %s21_s27 = sshll.u32 %s1861_s26, 4  ;;  %s34_s25 = int_to_ptr.vmem [resolvable:$true] %s33_s25  ;;  %s1907_s27 = int_to_ptr.vmem [resolvable:$true] %s21_s27 }
   0x5   :  { %s1742_s30 = scalar_lea.hbm %s2135_s1, 2048 }
   0x6   :  { %p1743_p0 = scmp.ne.s32.totalorder %s2135_s1, %s1742_s30  ;;  %p1746_p1 = scmp.lt.u32.totalorder %s1742_s30, %s2135_s1 }
   0x8   :  { %p1748_p2 = pnand %p1746_p1, %p1743_p0 }
   0xa   :  { %1751 = shalt.err (!%p1748_p2)
}
   0xb   :  { %s1752_s12 = scalar_lea.vmem %s34_s25, 2048  ;;  %p1757_p4 = scmp.lt.s32.totalorder %s34_s25, %s34_s25 }
   0xc   :  { %p1753_p3 = scmp.ne.s32.totalorder %s34_s25, %s1752_s12  ;;  %p1758_p5 = scmp.lt.s32.totalorder %s1752_s12, %s1752_s12 }
   0xe   :  { %p1759_p6 = por %p1758_p5, %p1757_p4 }
  0x10   :  { %p1760_p7 = pnand %p1759_p6, %p1753_p3 }
  0x12   :  { %1763 = shalt.err (!%p1760_p7)
}
  0x13   :  { %s1862_s13 = smov 128   ;;  %s1863_s14 = smov 8  }
  0x14   :  { %39 = dma.hbm_to_vmem [thread:$0]  %s2135_s1, 2048, %s34_s25, [#allocation8], %s1862_s13, %s1862_s13, %s1863_s14  }
  0x15   :  { %s1764_s19 = scalar_lea.hbm %s2134_s0, 4096 }
  0x16   :  { %p1765_p8 = scmp.ne.s32.totalorder %s2134_s0, %s1764_s19  ;;  %p1768_p9 = scmp.lt.u32.totalorder %s1764_s19, %s2134_s0 }
  0x18   :  { %p1770_p10 = pnand %p1768_p9, %p1765_p8 }
  0x1a   :  { %1773 = shalt.err (!%p1770_p10)
}
  0x1b   :  { %s1774_s24 = scalar_lea.vmem %s1907_s27, 4096  ;;  %p1779_p12 = scmp.lt.s32.totalorder %s1907_s27, %s1907_s27 }
  0x1c   :  { %p1775_p11 = scmp.ne.s32.totalorder %s1907_s27, %s1774_s24  ;;  %p1780_p13 = scmp.lt.s32.totalorder %s1774_s24, %s1774_s24 }
  0x1e   :  { %p1781_p0 = por %p1780_p13, %p1779_p12 }
  0x20   :  { %p1782_p1 = pnand %p1781_p0, %p1775_p11 }
  0x22   :  { %1785 = shalt.err (!%p1782_p1)
}
  0x23   :  { %27 = dma.hbm_to_vmem [thread:$0]  %s2134_s0, 4096, %s1907_s27, [#allocation5], %s1862_s13, %s1862_s13, %s1863_s14  }
  0x24   :  { %s1864_s26 = smov [#allocation9]   ;;  %s1865_s29 = smov [#allocation10]  }
  0x25   :  { %s47_s28 = sshll.u32 %s1864_s26, 4  ;;  %s61_s30 = sshll.u32 %s1865_s29, 4  ;;  %s48_s28 = int_to_ptr.vmem [resolvable:$true] %s47_s28  ;;  %s1944_s30 = int_to_ptr.vmem [resolvable:$true] %s61_s30 }
  0x26   :  { %s1786_s10 = scalar_lea.hbm %s2137_s3, 2048 }
  0x27   :  { %p1787_p2 = scmp.ne.s32.totalorder %s2137_s3, %s1786_s10  ;;  %p1790_p3 = scmp.lt.u32.totalorder %s1786_s10, %s2137_s3 }
  0x29   :  { %p1792_p4 = pnand %p1790_p3, %p1787_p2 }
  0x2b   :  { %1795 = shalt.err (!%p1792_p4)
}
  0x2c   :  { %s1796_s0 = scalar_lea.vmem %s48_s28, 2048  ;;  %p1801_p6 = scmp.lt.s32.totalorder %s48_s28, %s48_s28 }
  0x2d   :  { %p1797_p5 = scmp.ne.s32.totalorder %s48_s28, %s1796_s0  ;;  %p1802_p7 = scmp.lt.s32.totalorder %s1796_s0, %s1796_s0 }
  0x2f   :  { %p1803_p8 = por %p1802_p7, %p1801_p6 }
  0x31   :  { %p1804_p9 = pnand %p1803_p8, %p1797_p5 }
  0x33   :  { %1807 = shalt.err (!%p1804_p9)
}
  0x34   :  { %53 = dma.hbm_to_vmem [thread:$0]  %s2137_s3, 2048, %s48_s28, [#allocation8], %s1862_s13, %s1862_s13, %s1863_s14  }
  0x35   :  { %s1808_s20 = scalar_lea.hbm %s2139_s5, 2048 }
  0x36   :  { %p1809_p10 = scmp.ne.s32.totalorder %s2139_s5, %s1808_s20  ;;  %p1812_p11 = scmp.lt.u32.totalorder %s1808_s20, %s2139_s5 }
  0x38   :  { %p1814_p12 = pnand %p1812_p11, %p1809_p10 }
  0x3a   :  { %1817 = shalt.err (!%p1814_p12)
}
  0x3b   :  { %s1818_s1 = scalar_lea.vmem %s1944_s30, 2048  ;;  %p1823_p0 = scmp.lt.s32.totalorder %s1944_s30, %s1944_s30 }
  0x3c   :  { %p1819_p13 = scmp.ne.s32.totalorder %s1944_s30, %s1818_s1  ;;  %p1824_p1 = scmp.lt.s32.totalorder %s1818_s1, %s1818_s1 }
  0x3e   :  { %p1825_p2 = por %p1824_p1, %p1823_p0 }
  0x40   :  { %p1826_p3 = pnand %p1825_p2, %p1819_p13 }
  0x42   :  { %1829 = shalt.err (!%p1826_p3)
}
  0x43   :  { %67 = dma.hbm_to_vmem [thread:$0]  %s2139_s5, 2048, %s1944_s30, [#allocation11], %s1862_s13, %s1862_s13, %s1863_s14  }
  0x44   :  { %1852 = dma.done.wait [#allocation5], 4096  }
  0x45   :  { %1853 = vsyncadd [#allocation5], 4294963200 }
  0x46   :  { %1854 = dma.done.wait [#allocation8], 4096  }
  0x47   :  { %1855 = vsyncadd [#allocation8], 4294963200 }
  0x48   :  { %1856 = dma.done.wait [#allocation11], 2048  }
  0x49   :  { %1857 = vsyncadd [#allocation11], 4294965248  ;;  %v118_v0 = vld [vmem:[#allocation7] sm:$0xff]  ;;  %v119_v1 = vld [vmem:[#allocation7 + $0x8] sm:$0xff] }
  0x4a   :  { %v120_v2 = vld [vmem:[#allocation7 + $0x10] sm:$0xff]  ;;  %v1623_v3 = vpack.c.bf16 %v119_v1, %v118_v0  ;;  %v121_v4 = vld [vmem:[#allocation7 + $0x18] sm:$0xff]  ;;  %v122_v6 = vld [vmem:[#allocation7 + $0x20] sm:$0xff] }
  0x4b   :  { %v1627_v5 = vpack.c.bf16 %v121_v4, %v120_v2  ;;  %v123_v7 = vld [vmem:[#allocation7 + $0x28] sm:$0xff]  ;;  %v86_v9 = vld [vmem:[#allocation4] sm:$0xff]  ;;  %v124_v10 = vld [vmem:[#allocation7 + $0x30] sm:$0xff] }
  0x4c   :  { %1624 = vmatprep.subr.bf16.mxu0 %v1623_v3  ;;  %1719 = vmatprep.subr.bf16.mxu1 %v1623_v3  ;;  %v1631_v8 = vpack.c.bf16 %v123_v7, %v122_v6  ;;  %v125_v11 = vld [vmem:[#allocation7 + $0x38] sm:$0xff]  ;;  %v126_v13 = vld [vmem:[#allocation7 + $0x40] sm:$0xff]  ;;  %v127_v14 = vld [vmem:[#allocation7 + $0x48] sm:$0xff] }
  0x4d   :  { %1626 = vmatpush3.bf16.msra.mxu0 %v1623_v3  ;;  %1727 = vmatpush3.bf16.msra.mxu1 %v1623_v3  ;;  %v1635_v12 = vpack.c.bf16 %v125_v11, %v124_v10  ;;  %v102_v15 = vld [vmem:[#allocation4 + $0x80] sm:$0xff]  ;;  %v1639_v16 = vpack.c.bf16 %v127_v14, %v126_v13  ;;  %v128_v17 = vld [vmem:[#allocation7 + $0x50] sm:$0xff]  ;;  %v129_v18 = vld [vmem:[#allocation7 + $0x58] sm:$0xff] }
  0x4e   :  { %1628 = vmatprep.subr.bf16.mxu0 %v1627_v5  ;;  %1720 = vmatprep.subr.bf16.mxu1 %v1627_v5  ;;  %v1643_v19 = vpack.c.bf16 %v129_v18, %v128_v17  ;;  %v130_v20 = vld [vmem:[#allocation7 + $0x60] sm:$0xff]  ;;  %v131_v21 = vld [vmem:[#allocation7 + $0x68] sm:$0xff]  ;;  %v132_v23 = vld [vmem:[#allocation7 + $0x70] sm:$0xff] }
  0x4f   :  { %1415 = vmatprep.mubr.f32.mxu0 %v86_v9  ;;  %1439 = vmatprep.mubr.f32.mxu1 %v102_v15  ;;  %v1647_v22 = vpack.c.bf16 %v131_v21, %v130_v20  ;;  %v133_v24 = vld [vmem:[#allocation7 + $0x78] sm:$0xff]  ;;  %v494_v26 = vld [vmem:[#allocation9] sm:$0xff]  ;;  %v495_v27 = vld [vmem:[#allocation9 + $0x8] sm:$0xff] }
  0x50   :  { %v1651_v25 = vpack.c.bf16 %v133_v24, %v132_v23  ;;  %v1655_v28 = vpack.c.bf16 %v495_v27, %v494_v26  ;;  %v496_v29 = vld [vmem:[#allocation9 + $0x10] sm:$0xff]  ;;  %v497_v30 = vld [vmem:[#allocation9 + $0x18] sm:$0xff]  ;;  %v87_v31 = vld [vmem:[#allocation4 + $0x8] sm:$0xff] }
  0x51   :  { %1630 = vmatpush3.bf16.msra.mxu0 %v1627_v5  ;;  %1728 = vmatpush3.bf16.msra.mxu1 %v1627_v5  ;;  %v103_v32 = vld [vmem:[#allocation4 + $0x88] sm:$0xff]  ;;  %v88_v33 = vld [vmem:[#allocation4 + $0x10] sm:$0xff]  ;;  %v1659_v35 = vpack.c.bf16 %v497_v30, %v496_v29  ;;  %v498_v36 = vld [vmem:[#allocation9 + $0x20] sm:$0xff] }
  0x52   :  { %1632 = vmatprep.subr.bf16.mxu0 %v1631_v8  ;;  %1721 = vmatprep.subr.bf16.mxu1 %v1631_v8  ;;  %v104_v34 = vld [vmem:[#allocation4 + $0x90] sm:$0xff]  ;;  %v499_v37 = vld [vmem:[#allocation9 + $0x28] sm:$0xff]  ;;  %v89_v38 = vld [vmem:[#allocation4 + $0x18] sm:$0xff] }
  0x53   :  { %v105_v39 = vld [vmem:[#allocation4 + $0x98] sm:$0xff]  ;;  %v90_v40 = vld [vmem:[#allocation4 + $0x20] sm:$0xff]  ;;  %v1663_v42 = vpack.c.bf16 %v499_v37, %v498_v36  ;;  %v500_v43 = vld [vmem:[#allocation9 + $0x30] sm:$0xff] }
  0x54   :  { %v106_v41 = vld [vmem:[#allocation4 + $0xa0] sm:$0xff]  ;;  %v501_v44 = vld [vmem:[#allocation9 + $0x38] sm:$0xff]  ;;  %v91_v45 = vld [vmem:[#allocation4 + $0x28] sm:$0xff] }
  0x55   :  { %1634 = vmatpush3.bf16.msra.mxu0 %v1631_v8  ;;  %1729 = vmatpush3.bf16.msra.mxu1 %v1631_v8  ;;  %v107_v46 = vld [vmem:[#allocation4 + $0xa8] sm:$0xff]  ;;  %v92_v47 = vld [vmem:[#allocation4 + $0x30] sm:$0xff]  ;;  %v1667_v49 = vpack.c.bf16 %v501_v44, %v500_v43  ;;  %v502_v50 = vld [vmem:[#allocation9 + $0x40] sm:$0xff] }
  0x56   :  { %1636 = vmatprep.subr.bf16.mxu0 %v1635_v12  ;;  %1722 = vmatprep.subr.bf16.mxu1 %v1635_v12  ;;  %v108_v48 = vld [vmem:[#allocation4 + $0xb0] sm:$0xff]  ;;  %v503_v51 = vld [vmem:[#allocation9 + $0x48] sm:$0xff]  ;;  %v93_v52 = vld [vmem:[#allocation4 + $0x38] sm:$0xff] }
  0x57   :  { %v109_v53 = vld [vmem:[#allocation4 + $0xb8] sm:$0xff]  ;;  %v94_v54 = vld [vmem:[#allocation4 + $0x40] sm:$0xff]  ;;  %v1671_v56 = vpack.c.bf16 %v503_v51, %v502_v50  ;;  %v504_v57 = vld [vmem:[#allocation9 + $0x50] sm:$0xff] }
  0x58   :  { %v110_v55 = vld [vmem:[#allocation4 + $0xc0] sm:$0xff]  ;;  %v505_v58 = vld [vmem:[#allocation9 + $0x58] sm:$0xff]  ;;  %v95_v59 = vld [vmem:[#allocation4 + $0x48] sm:$0xff] }
  0x59   :  { %1638 = vmatpush3.bf16.msra.mxu0 %v1635_v12  ;;  %1730 = vmatpush3.bf16.msra.mxu1 %v1635_v12  ;;  %v111_v60 = vld [vmem:[#allocation4 + $0xc8] sm:$0xff]  ;;  %v96_v61 = vld [vmem:[#allocation4 + $0x50] sm:$0xff]  ;;  %v1675_v63 = vpack.c.bf16 %v505_v58, %v504_v57  ;;  %v506_v0 = vld [vmem:[#allocation9 + $0x60] sm:$0xff] }
  0x5a   :  { %1640 = vmatprep.subr.bf16.mxu0 %v1639_v16  ;;  %1723 = vmatprep.subr.bf16.mxu1 %v1639_v16  ;;  %v112_v62 = vld [vmem:[#allocation4 + $0xd0] sm:$0xff]  ;;  %v507_v1 = vld [vmem:[#allocation9 + $0x68] sm:$0xff]  ;;  %v97_v2 = vld [vmem:[#allocation4 + $0x58] sm:$0xff] }
  0x5b   :  { %v113_v3 = vld [vmem:[#allocation4 + $0xd8] sm:$0xff]  ;;  %v98_v4 = vld [vmem:[#allocation4 + $0x60] sm:$0xff]  ;;  %v1679_v6 = vpack.c.bf16 %v507_v1, %v506_v0  ;;  %v99_v7 = vld [vmem:[#allocation4 + $0x68] sm:$0xff] }
  0x5c   :  { %v114_v5 = vld [vmem:[#allocation4 + $0xe0] sm:$0xff]  ;;  %v115_v8 = vld [vmem:[#allocation4 + $0xe8] sm:$0xff]  ;;  %v100_v9 = vld [vmem:[#allocation4 + $0x70] sm:$0xff] }
  0x5d   :  { %1642 = vmatpush3.bf16.msra.mxu0 %v1639_v16  ;;  %1731 = vmatpush3.bf16.msra.mxu1 %v1639_v16  ;;  %v116_v10 = vld [vmem:[#allocation4 + $0xf0] sm:$0xff]  ;;  %v101_v11 = vld [vmem:[#allocation4 + $0x78] sm:$0xff]  ;;  %v806_v16 = vld [vmem:[#allocation10] sm:$0xff] }
  0x5e   :  { %1644 = vmatprep.subr.bf16.mxu0 %v1643_v19  ;;  %1724 = vmatprep.subr.bf16.mxu1 %v1643_v19  ;;  %v117_v12 = vld [vmem:[#allocation4 + $0xf8] sm:$0xff]  ;;  %v508_v13 = vld [vmem:[#allocation9 + $0x70] sm:$0xff]  ;;  %v807_v17 = vld [vmem:[#allocation10 + $0x8] sm:$0xff] }
  0x5f   :  { %v509_v14 = vld [vmem:[#allocation9 + $0x78] sm:$0xff]  ;;  %v808_v18 = vld [vmem:[#allocation10 + $0x10] sm:$0xff]  ;;  %v811_v23 = vld [vmem:[#allocation10 + $0x28] sm:$0xff] }
  0x60   :  { %v1683_v15 = vpack.c.bf16 %v509_v14, %v508_v13  ;;  %v809_v20 = vld [vmem:[#allocation10 + $0x18] sm:$0xff]  ;;  %v815_v29 = vld [vmem:[#allocation10 + $0x48] sm:$0xff]  ;;  %v1984_v37 = vld [vmem:[%s2136_s2] ss:$0 sm:$0xff] }
  0x61   :  { %1646 = vmatpush3.bf16.msra.mxu0 %v1643_v19  ;;  %1732 = vmatpush3.bf16.msra.mxu1 %v1643_v19  ;;  %v1687_v19 = vpack.c.bf16 %v807_v17, %v806_v16  ;;  %v1691_v21 = vpack.c.bf16 %v809_v20, %v808_v18  ;;  %v813_v26 = vld [vmem:[#allocation10 + $0x38] sm:$0xff] }
  0x62   :  { %1648 = vmatprep.subr.bf16.mxu0 %v1647_v22  ;;  %1725 = vmatprep.subr.bf16.mxu1 %v1647_v22 }
  0x65   :  { %1650 = vmatpush3.bf16.msra.mxu0 %v1647_v22  ;;  %1733 = vmatpush3.bf16.msra.mxu1 %v1647_v22  ;;  %v810_v22 = vld [vmem:[#allocation10 + $0x20] sm:$0xff] }
  0x66   :  { %1652 = vmatprep.subr.bf16.mxu0 %v1651_v25  ;;  %1726 = vmatprep.subr.bf16.mxu1 %v1651_v25  ;;  %v1695_v24 = vpack.c.bf16 %v811_v23, %v810_v22 }
  0x69   :  { %1654 = vmatpush3.bf16.msra.mxu0 %v1651_v25  ;;  %1734 = vmatpush3.bf16.msra.mxu1 %v1651_v25  ;;  %v812_v25 = vld [vmem:[#allocation10 + $0x30] sm:$0xff] }
  0x6a   :  { %1656 = vmatprep.subr.bf16.mxu1 %v1655_v28  ;;  %1688 = vmatprep.subr.bf16.mxu0 %v1687_v19  ;;  %v1699_v27 = vpack.c.bf16 %v813_v26, %v812_v25 }
  0x6c   :  { %1416 = vmatmul.mubr.f32.vlgmr.msra.gmra.mrb[0].mxu0 %v87_v31  ;;  %1440 = vmatmul.mubr.f32.vlgmr.msra.gmra.mrb[0].mxu1 %v103_v32  ;;  %v816_v31 = vld [vmem:[#allocation10 + $0x50] sm:$0xff]  ;;  %v817_v32 = vld [vmem:[#allocation10 + $0x58] sm:$0xff] }
  0x6d   :  { %1418 = vmatprep.mubr.f32.mxu0 %v88_v33  ;;  %1442 = vmatprep.mubr.f32.mxu1 %v104_v34  ;;  %v1707_v33 = vpack.c.bf16 %v817_v32, %v816_v31  ;;  %v818_v34 = vld [vmem:[#allocation10 + $0x60] sm:$0xff] }
  0x6e   :  { %1658 = vmatpush3.bf16.msra.mxu1 %v1655_v28  ;;  %1690 = vmatpush3.bf16.msra.mxu0 %v1687_v19  ;;  %v814_v28 = vld [vmem:[#allocation10 + $0x40] sm:$0xff] }
  0x6f   :  { %1660 = vmatprep.subr.bf16.mxu1 %v1659_v35  ;;  %1692 = vmatprep.subr.bf16.mxu0 %v1691_v21  ;;  %v1703_v30 = vpack.c.bf16 %v815_v29, %v814_v28 }
  0x70   :  { %1419 = vmatmul.mubr.f32.gmra.mrb[2].mxu0 %v89_v38  ;;  %1443 = vmatmul.mubr.f32.gmra.mrb[2].mxu1 %v105_v39 }
  0x71   :  { %1421 = vmatprep.mubr.f32.mxu0 %v90_v40  ;;  %1445 = vmatprep.mubr.f32.mxu1 %v106_v41 }
  0x72   :  { %1662 = vmatpush3.bf16.msra.mxu1 %v1659_v35  ;;  %1694 = vmatpush3.bf16.msra.mxu0 %v1691_v21  ;;  %v819_v35 = vld [vmem:[#allocation10 + $0x68] sm:$0xff] }
  0x73   :  { %1664 = vmatprep.subr.bf16.mxu1 %v1663_v42  ;;  %1696 = vmatprep.subr.bf16.mxu0 %v1695_v24  ;;  %v1711_v36 = vpack.c.bf16 %v819_v35, %v818_v34 }
  0x74   :  { %1422 = vmatmul.mubr.f32.gmra.mrb[4].mxu0 %v91_v45  ;;  %1446 = vmatmul.mubr.f32.gmra.mrb[4].mxu1 %v107_v46 }
  0x75   :  { %1424 = vmatprep.mubr.f32.mxu0 %v92_v47  ;;  %1448 = vmatprep.mubr.f32.mxu1 %v108_v48 }
  0x76   :  { %1666 = vmatpush3.bf16.msra.mxu1 %v1663_v42  ;;  %1698 = vmatpush3.bf16.msra.mxu0 %v1695_v24 }
  0x77   :  { %1668 = vmatprep.subr.bf16.mxu1 %v1667_v49  ;;  %1700 = vmatprep.subr.bf16.mxu0 %v1699_v27 }
  0x78   :  { %1425 = vmatmul.mubr.f32.gmra.mrb[6].mxu0 %v93_v52  ;;  %1449 = vmatmul.mubr.f32.gmra.mrb[6].mxu1 %v109_v53 }
  0x79   :  { %1427 = vmatprep.mubr.f32.mxu0 %v94_v54  ;;  %1451 = vmatprep.mubr.f32.mxu1 %v110_v55 }
  0x7a   :  { %1670 = vmatpush3.bf16.msra.mxu1 %v1667_v49  ;;  %1702 = vmatpush3.bf16.msra.mxu0 %v1699_v27 }
  0x7b   :  { %1672 = vmatprep.subr.bf16.mxu1 %v1671_v56  ;;  %1704 = vmatprep.subr.bf16.mxu0 %v1703_v30 }
  0x7c   :  { %1428 = vmatmul.mubr.f32.gmra.mrb[8].mxu0 %v95_v59  ;;  %1452 = vmatmul.mubr.f32.gmra.mrb[8].mxu1 %v111_v60 }
  0x7d   :  { %1430 = vmatprep.mubr.f32.mxu0 %v96_v61  ;;  %1454 = vmatprep.mubr.f32.mxu1 %v112_v62 }
  0x7e   :  { %1674 = vmatpush3.bf16.msra.mxu1 %v1671_v56  ;;  %1706 = vmatpush3.bf16.msra.mxu0 %v1703_v30 }
  0x7f   :  { %1676 = vmatprep.subr.bf16.mxu1 %v1675_v63  ;;  %1708 = vmatprep.subr.bf16.mxu0 %v1707_v33 }
  0x80   :  { %1431 = vmatmul.mubr.f32.gmra.mrb[10].mxu0 %v97_v2  ;;  %1455 = vmatmul.mubr.f32.gmra.mrb[10].mxu1 %v113_v3 }
  0x81   :  { %1433 = vmatprep.mubr.f32.mxu0 %v98_v4  ;;  %1457 = vmatprep.mubr.f32.mxu1 %v114_v5 }
  0x82   :  { %1678 = vmatpush3.bf16.msra.mxu1 %v1675_v63  ;;  %1710 = vmatpush3.bf16.msra.mxu0 %v1707_v33 }
  0x83   :  { %1680 = vmatprep.subr.bf16.mxu1 %v1679_v6  ;;  %1712 = vmatprep.subr.bf16.mxu0 %v1711_v36 }
  0x84   :  { %1434 = vmatmul.mubr.f32.gmra.mrb[12].mxu0 %v99_v7  ;;  %1458 = vmatmul.mubr.f32.gmra.mrb[12].mxu1 %v115_v8 }
  0x85   :  { %1436 = vmatprep.mubr.f32.mxu0 %v100_v9  ;;  %1460 = vmatprep.mubr.f32.mxu1 %v116_v10 }
  0x86   :  { %1682 = vmatpush3.bf16.msra.mxu1 %v1679_v6  ;;  %1714 = vmatpush3.bf16.msra.mxu0 %v1711_v36 }
  0x87   :  { %1684 = vmatprep.subr.bf16.mxu1 %v1683_v15 }
  0x88   :  { %1437 = vmatmul.mubr.f32.gmra.mrb[14].mxu0 %v101_v11  ;;  %1461 = vmatmul.mubr.f32.gmra.mrb[14].mxu1 %v117_v12 }
  0x8a   :  { %1686 = vmatpush3.bf16.msra.mxu1 %v1683_v15 }
 0x13f   :  { %v1417_v38 = vpop.f32.mrb[0].mxu0  ;;  %v1986_v39 = vpop.f32.mrb[0].mxu1 }
 0x140   :  { %v213_v40 = vadd.f32 %v1417_v38, %v1984_v37  ;;  %v207_v41 = vpop.f32.mrb[1].mxu0  ;;  %v1989_v42 = vpop.f32.mrb[1].mxu1 }
 0x141   :  { %v208_v43 = vadd.f32 %v1984_v37, %v207_v41  ;;  %v288_v30 = vadd.f32 %v1984_v37, %v1989_v42 }
 0x142   :  { %v367_v47 = vmax.f32 %v213_v40, 0.0 }
 0x143   :  { %v366_v44 = vmax.f32 %v208_v43, 0.0  ;;  %v1420_v45 = vpop.f32.mrb[2].mxu0  ;;  %v1992_v46 = vpop.f32.mrb[2].mxu1  ;;  %v382_v40 = vmax.f32 %v288_v30, 0.0 }
 0x144   :  { %v223_v48 = vadd.f32 %v1420_v45, %v1984_v37  ;;  %v217_v49 = vpop.f32.mrb[3].mxu0  ;;  %v1995_v50 = vpop.f32.mrb[3].mxu1 }
 0x145   :  { %v218_v51 = vadd.f32 %v1984_v37, %v217_v49  ;;  %1495 = vmatprep.mubr.f32.mxu1 %v366_v44  ;;  %v298_v41 = vadd.f32 %v1984_v37, %v1995_v50  ;;  %v293_v44 = vadd.f32 %v1986_v39, %v1984_v37 }
 0x146   :  { %1496 = vmatmul.mubr.f32.vlgmr.msra.gmra.mrb[16].mxu1 %v367_v47  ;;  %v369_v55 = vmax.f32 %v223_v48, 0.0  ;;  %v303_v48 = vadd.f32 %v1992_v46, %v1984_v37 }
 0x147   :  { %v368_v52 = vmax.f32 %v218_v51, 0.0  ;;  %v1423_v53 = vpop.f32.mrb[4].mxu0  ;;  %v1998_v54 = vpop.f32.mrb[4].mxu1  ;;  %v384_v42 = vmax.f32 %v298_v41, 0.0  ;;  %v383_v47 = vmax.f32 %v293_v44, 0.0 }
 0x148   :  { %v233_v56 = vadd.f32 %v1423_v53, %v1984_v37  ;;  %v227_v57 = vpop.f32.mrb[5].mxu0  ;;  %v2001_v58 = vpop.f32.mrb[5].mxu1  ;;  %v385_v51 = vmax.f32 %v303_v48, 0.0  ;;  %v313_v39 = vadd.f32 %v1998_v54, %v1984_v37 }
 0x149   :  { %v228_v59 = vadd.f32 %v1984_v37, %v227_v57  ;;  %1498 = vmatprep.mubr.f32.mxu1 %v368_v52  ;;  %v308_v45 = vadd.f32 %v1984_v37, %v2001_v58 }
 0x14a   :  { %1499 = vmatmul.mubr.f32.gmra.mrb[18].mxu1 %v369_v55  ;;  %v371_v63 = vmax.f32 %v233_v56, 0.0  ;;  %v387_v55 = vmax.f32 %v313_v39, 0.0 }
 0x14b   :  { %v370_v60 = vmax.f32 %v228_v59, 0.0  ;;  %v1426_v61 = vpop.f32.mrb[6].mxu0  ;;  %v2004_v62 = vpop.f32.mrb[6].mxu1  ;;  %v386_v49 = vmax.f32 %v308_v45, 0.0 }
 0x14c   :  { %v243_v0 = vadd.f32 %v1426_v61, %v1984_v37  ;;  %v237_v1 = vpop.f32.mrb[7].mxu0  ;;  %v317_v2 = vpop.f32.mrb[7].mxu1  ;;  %v323_v56 = vadd.f32 %v2004_v62, %v1984_v37 }
 0x14d   :  { %v238_v3 = vadd.f32 %v1984_v37, %v237_v1  ;;  %1501 = vmatprep.mubr.f32.mxu1 %v370_v60  ;;  %v318_v50 = vadd.f32 %v1984_v37, %v317_v2 }
 0x14e   :  { %1502 = vmatmul.mubr.f32.gmra.mrb[20].mxu1 %v371_v63  ;;  %v373_v7 = vmax.f32 %v243_v0, 0.0  ;;  %v389_v58 = vmax.f32 %v323_v56, 0.0 }
 0x14f   :  { %v372_v4 = vmax.f32 %v238_v3, 0.0  ;;  %v1429_v5 = vpop.f32.mrb[8].mxu0  ;;  %v2008_v6 = vpop.f32.mrb[8].mxu1  ;;  %v388_v52 = vmax.f32 %v318_v50, 0.0 }
 0x150   :  { %v253_v8 = vadd.f32 %v1429_v5, %v1984_v37  ;;  %v247_v9 = vpop.f32.mrb[9].mxu0  ;;  %v327_v10 = vpop.f32.mrb[9].mxu1  ;;  %v333_v59 = vadd.f32 %v2008_v6, %v1984_v37 }
 0x151   :  { %v248_v11 = vadd.f32 %v1984_v37, %v247_v9  ;;  %1504 = vmatprep.mubr.f32.mxu1 %v372_v4  ;;  %v328_v53 = vadd.f32 %v1984_v37, %v327_v10  ;;  %v2048_v10 = vld [vmem:[%s2138_s4] ss:$0 sm:$0xff] }
 0x152   :  { %1505 = vmatmul.mubr.f32.gmra.mrb[22].mxu1 %v373_v7  ;;  %v375_v15 = vmax.f32 %v253_v8, 0.0  ;;  %v391_v61 = vmax.f32 %v333_v59, 0.0  ;;  %v820_v7 = vld [vmem:[#allocation10 + $0x70] sm:$0xff]  ;;  %v821_v8 = vld [vmem:[#allocation10 + $0x78] sm:$0xff] }
 0x153   :  { %v374_v12 = vmax.f32 %v248_v11, 0.0  ;;  %v1432_v13 = vpop.f32.mrb[10].mxu0  ;;  %v2012_v14 = vpop.f32.mrb[10].mxu1  ;;  %v390_v46 = vmax.f32 %v328_v53, 0.0  ;;  %v1715_v9 = vpack.c.bf16 %v821_v8, %v820_v7 }
 0x154   :  { %v263_v16 = vadd.f32 %v1432_v13, %v1984_v37  ;;  %v257_v17 = vpop.f32.mrb[11].mxu0  ;;  %v337_v18 = vpop.f32.mrb[11].mxu1  ;;  %v343_v63 = vadd.f32 %v2012_v14, %v1984_v37 }
 0x155   :  { %v258_v19 = vadd.f32 %v1984_v37, %v257_v17  ;;  %1507 = vmatprep.mubr.f32.mxu1 %v374_v12  ;;  %v338_v57 = vadd.f32 %v1984_v37, %v337_v18  ;;  %1716 = vmatprep.subr.bf16.mxu0 %v1715_v9 }
 0x156   :  { %1508 = vmatmul.mubr.f32.gmra.mrb[24].mxu1 %v375_v15  ;;  %v377_v23 = vmax.f32 %v263_v16, 0.0  ;;  %v393_v1 = vmax.f32 %v343_v63, 0.0  ;;  %1718 = vmatpush3.bf16.msra.mxu0 %v1715_v9 }
 0x157   :  { %v376_v20 = vmax.f32 %v258_v19, 0.0  ;;  %v1435_v21 = vpop.f32.mrb[12].mxu0  ;;  %v1459_v22 = vpop.f32.mrb[12].mxu1  ;;  %v392_v54 = vmax.f32 %v338_v57, 0.0 }
 0x158   :  { %v273_v24 = vadd.f32 %v1435_v21, %v1984_v37  ;;  %v267_v25 = vpop.f32.mrb[13].mxu0  ;;  %v347_v26 = vpop.f32.mrb[13].mxu1  ;;  %v353_v2 = vadd.f32 %v1459_v22, %v1984_v37 }
 0x159   :  { %v268_v27 = vadd.f32 %v1984_v37, %v267_v25  ;;  %1510 = vmatprep.mubr.f32.mxu1 %v376_v20  ;;  %v348_v60 = vadd.f32 %v1984_v37, %v347_v26 }
 0x15a   :  { %1511 = vmatmul.mubr.f32.gmra.mrb[26].mxu1 %v377_v23  ;;  %v379_v32 = vmax.f32 %v273_v24, 0.0  ;;  %v395_v4 = vmax.f32 %v353_v2, 0.0 }
 0x15b   :  { %v378_v28 = vmax.f32 %v268_v27, 0.0  ;;  %v1438_v29 = vpop.f32.mrb[14].mxu0  ;;  %v1462_v31 = vpop.f32.mrb[14].mxu1  ;;  %v394_v62 = vmax.f32 %v348_v60, 0.0 }
 0x15c   :  { %v283_v33 = vadd.f32 %v1438_v29, %v1984_v37  ;;  %v277_v34 = vpop.f32.mrb[15].mxu0  ;;  %v357_v35 = vpop.f32.mrb[15].mxu1  ;;  %v363_v5 = vadd.f32 %v1462_v31, %v1984_v37 }
 0x15d   :  { %v278_v36 = vadd.f32 %v1984_v37, %v277_v34  ;;  %1513 = vmatprep.mubr.f32.mxu1 %v378_v28  ;;  %v358_v0 = vadd.f32 %v1984_v37, %v357_v35 }
 0x15e   :  { %1514 = vmatmul.mubr.f32.gmra.mrb[28].mxu1 %v379_v32  ;;  %v381_v43 = vmax.f32 %v283_v33, 0.0  ;;  %v397_v6 = vmax.f32 %v363_v5, 0.0 }
 0x15f   :  { %v380_v38 = vmax.f32 %v278_v36, 0.0  ;;  %v396_v3 = vmax.f32 %v358_v0, 0.0 }
 0x161   :  { %1516 = vmatprep.mubr.f32.mxu1 %v380_v38 }
 0x162   :  { %1517 = vmatmul.mubr.f32.gmra.mrb[30].mxu1 %v381_v43 }
 0x163   :  { %1519 = vmatprep.mubr.f32.mxu1 %v382_v40 }
 0x166   :  { %1520 = vmatmul.mubr.f32.gmra.mrb[32].mxu1 %v383_v47 }
 0x167   :  { %1522 = vmatprep.mubr.f32.mxu1 %v384_v42 }
 0x16a   :  { %1523 = vmatmul.mubr.f32.gmra.mrb[34].mxu1 %v385_v51 }
 0x16b   :  { %1525 = vmatprep.mubr.f32.mxu1 %v386_v49 }
 0x16e   :  { %1526 = vmatmul.mubr.f32.gmra.mrb[36].mxu1 %v387_v55 }
 0x16f   :  { %1528 = vmatprep.mubr.f32.mxu1 %v388_v52 }
 0x172   :  { %1529 = vmatmul.mubr.f32.gmra.mrb[38].mxu1 %v389_v58 }
 0x173   :  { %1531 = vmatprep.mubr.f32.mxu1 %v390_v46 }
 0x176   :  { %1532 = vmatmul.mubr.f32.gmra.mrb[40].mxu1 %v391_v61 }
 0x177   :  { %1534 = vmatprep.mubr.f32.mxu1 %v392_v54 }
 0x17a   :  { %1535 = vmatmul.mubr.f32.gmra.mrb[42].mxu1 %v393_v1 }
 0x17b   :  { %1537 = vmatprep.mubr.f32.mxu1 %v394_v62 }
 0x17e   :  { %1538 = vmatmul.mubr.f32.gmra.mrb[44].mxu1 %v395_v4 }
 0x17f   :  { %1540 = vmatprep.mubr.f32.mxu1 %v396_v3 }
 0x182   :  { %1541 = vmatmul.mubr.f32.gmra.mrb[46].mxu1 %v397_v6 }
 0x219   :  { %v1497_v11 = vpop.f32.mrb[16].mxu1 }
 0x21a   :  { %v589_v12 = vadd.f32 %v1497_v11, %v2048_v10  ;;  %v583_v13 = vpop.f32.mrb[17].mxu1 }
 0x21b   :  { %v584_v37 = vadd.f32 %v2048_v10, %v583_v13 }
 0x21c   :  { %v743_v16 = vmax.f32 %v589_v12, 0.0 }
 0x21d   :  { %v742_v14 = vmax.f32 %v584_v37, 0.0  ;;  %v1500_v15 = vpop.f32.mrb[18].mxu1 }
 0x21e   :  { %v599_v17 = vadd.f32 %v1500_v15, %v2048_v10  ;;  %v593_v18 = vpop.f32.mrb[19].mxu1 }
 0x21f   :  { %v594_v19 = vadd.f32 %v2048_v10, %v593_v18  ;;  %1575 = vmatprep.mubr.f32.mxu0 %v742_v14 }
 0x220   :  { %1576 = vmatmul.mubr.f32.vlgmr.msra.gmra.mrb[16].mxu0 %v743_v16  ;;  %v745_v22 = vmax.f32 %v599_v17, 0.0 }
 0x221   :  { %v744_v20 = vmax.f32 %v594_v19, 0.0  ;;  %v1503_v21 = vpop.f32.mrb[20].mxu1 }
 0x222   :  { %v609_v23 = vadd.f32 %v1503_v21, %v2048_v10  ;;  %v603_v24 = vpop.f32.mrb[21].mxu1 }
 0x223   :  { %v604_v25 = vadd.f32 %v2048_v10, %v603_v24  ;;  %1578 = vmatprep.mubr.f32.mxu0 %v744_v20 }
 0x224   :  { %1579 = vmatmul.mubr.f32.gmra.mrb[18].mxu0 %v745_v22  ;;  %v747_v28 = vmax.f32 %v609_v23, 0.0 }
 0x225   :  { %v746_v26 = vmax.f32 %v604_v25, 0.0  ;;  %v1506_v27 = vpop.f32.mrb[22].mxu1 }
 0x226   :  { %v619_v29 = vadd.f32 %v1506_v27, %v2048_v10  ;;  %v613_v30 = vpop.f32.mrb[23].mxu1 }
 0x227   :  { %v614_v31 = vadd.f32 %v2048_v10, %v613_v30  ;;  %1581 = vmatprep.mubr.f32.mxu0 %v746_v26 }
 0x228   :  { %1582 = vmatmul.mubr.f32.gmra.mrb[20].mxu0 %v747_v28  ;;  %v749_v34 = vmax.f32 %v619_v29, 0.0 }
 0x229   :  { %v748_v32 = vmax.f32 %v614_v31, 0.0  ;;  %v1509_v33 = vpop.f32.mrb[24].mxu1 }
 0x22a   :  { %v629_v35 = vadd.f32 %v1509_v33, %v2048_v10  ;;  %v623_v36 = vpop.f32.mrb[25].mxu1 }
 0x22b   :  { %v624_v38 = vadd.f32 %v2048_v10, %v623_v36  ;;  %1584 = vmatprep.mubr.f32.mxu0 %v748_v32 }
 0x22c   :  { %1585 = vmatmul.mubr.f32.gmra.mrb[22].mxu0 %v749_v34  ;;  %v751_v43 = vmax.f32 %v629_v35, 0.0 }
 0x22d   :  { %v750_v40 = vmax.f32 %v624_v38, 0.0  ;;  %v1512_v41 = vpop.f32.mrb[26].mxu1 }
 0x22e   :  { %v639_v44 = vadd.f32 %v1512_v41, %v2048_v10  ;;  %v633_v42 = vpop.f32.mrb[27].mxu1 }
 0x22f   :  { %v634_v45 = vadd.f32 %v2048_v10, %v633_v42  ;;  %1587 = vmatprep.mubr.f32.mxu0 %v750_v40 }
 0x230   :  { %1588 = vmatmul.mubr.f32.gmra.mrb[24].mxu0 %v751_v43  ;;  %v753_v49 = vmax.f32 %v639_v44, 0.0 }
 0x231   :  { %v752_v47 = vmax.f32 %v634_v45, 0.0  ;;  %v1515_v48 = vpop.f32.mrb[28].mxu1  ;;  %v2085_v45 = vld [vmem:[%s2140_s6] ss:$0 sm:$0xff]  ;;  %s1866_s6 = smov [#allocation12]  }
 0x232   :  { %v649_v50 = vadd.f32 %v1515_v48, %v2048_v10  ;;  %v643_v51 = vpop.f32.mrb[29].mxu1  ;;  %s1222_s30 = sshll.u32 %s1866_s6, 4  ;;  %s1223_s30 = int_to_ptr.vmem [resolvable:$true] %s1222_s30 }
 0x233   :  { %v644_v39 = vadd.f32 %v2048_v10, %v643_v51  ;;  %1590 = vmatprep.mubr.f32.mxu0 %v752_v47  ;;  %s1830_s8 = scalar_lea.vmem %s1223_s30, 4096  ;;  %p1835_p5 = scmp.lt.s32.totalorder %s1223_s30, %s1223_s30 }
 0x234   :  { %1591 = vmatmul.mubr.f32.gmra.mrb[26].mxu0 %v753_v49  ;;  %v755_v55 = vmax.f32 %v649_v50, 0.0  ;;  %p1831_p4 = scmp.ne.s32.totalorder %s1223_s30, %s1830_s8  ;;  %p1836_p6 = scmp.lt.s32.totalorder %s1830_s8, %s1830_s8 }
 0x235   :  { %v754_v52 = vmax.f32 %v644_v39, 0.0  ;;  %v1518_v53 = vpop.f32.mrb[30].mxu1 }
 0x236   :  { %v659_v56 = vadd.f32 %v1518_v53, %v2048_v10  ;;  %v653_v46 = vpop.f32.mrb[31].mxu1  ;;  %p1837_p7 = por %p1836_p6, %p1835_p5 }
 0x237   :  { %v654_v57 = vadd.f32 %v2048_v10, %v653_v46  ;;  %1593 = vmatprep.mubr.f32.mxu0 %v754_v52 }
 0x238   :  { %1594 = vmatmul.mubr.f32.gmra.mrb[28].mxu0 %v755_v55  ;;  %v757_v54 = vmax.f32 %v659_v56, 0.0  ;;  %p1838_p8 = pnand %p1837_p7, %p1831_p4 }
 0x239   :  { %v756_v58 = vmax.f32 %v654_v57, 0.0  ;;  %v1521_v59 = vpop.f32.mrb[32].mxu1 }
 0x23a   :  { %v669_v60 = vadd.f32 %v1521_v59, %v2048_v10  ;;  %v663_v61 = vpop.f32.mrb[33].mxu1 }
 0x23b   :  { %v664_v63 = vadd.f32 %v2048_v10, %v663_v61  ;;  %1596 = vmatprep.mubr.f32.mxu0 %v756_v58 }
 0x23c   :  { %1597 = vmatmul.mubr.f32.gmra.mrb[30].mxu0 %v757_v54  ;;  %v759_v1 = vmax.f32 %v669_v60, 0.0 }
 0x23d   :  { %v758_v62 = vmax.f32 %v664_v63, 0.0  ;;  %v1524_v0 = vpop.f32.mrb[34].mxu1 }
 0x23e   :  { %v679_v2 = vadd.f32 %v1524_v0, %v2048_v10  ;;  %v673_v3 = vpop.f32.mrb[35].mxu1 }
 0x23f   :  { %v674_v4 = vadd.f32 %v2048_v10, %v673_v3  ;;  %1599 = vmatprep.mubr.f32.mxu0 %v758_v62 }
 0x240   :  { %1600 = vmatmul.mubr.f32.gmra.mrb[32].mxu0 %v759_v1  ;;  %v761_v7 = vmax.f32 %v679_v2, 0.0 }
 0x241   :  { %v760_v5 = vmax.f32 %v674_v4, 0.0  ;;  %v1527_v6 = vpop.f32.mrb[36].mxu1 }
 0x242   :  { %v689_v8 = vadd.f32 %v1527_v6, %v2048_v10  ;;  %v683_v9 = vpop.f32.mrb[37].mxu1 }
 0x243   :  { %v684_v11 = vadd.f32 %v2048_v10, %v683_v9  ;;  %1602 = vmatprep.mubr.f32.mxu0 %v760_v5 }
 0x244   :  { %1603 = vmatmul.mubr.f32.gmra.mrb[34].mxu0 %v761_v7  ;;  %v763_v37 = vmax.f32 %v689_v8, 0.0 }
 0x245   :  { %v762_v12 = vmax.f32 %v684_v11, 0.0  ;;  %v1530_v13 = vpop.f32.mrb[38].mxu1 }
 0x246   :  { %v699_v14 = vadd.f32 %v1530_v13, %v2048_v10  ;;  %v693_v15 = vpop.f32.mrb[39].mxu1 }
 0x247   :  { %v694_v16 = vadd.f32 %v2048_v10, %v693_v15  ;;  %1605 = vmatprep.mubr.f32.mxu0 %v762_v12 }
 0x248   :  { %1606 = vmatmul.mubr.f32.gmra.mrb[36].mxu0 %v763_v37  ;;  %v765_v19 = vmax.f32 %v699_v14, 0.0 }
 0x249   :  { %v764_v17 = vmax.f32 %v694_v16, 0.0  ;;  %v1533_v18 = vpop.f32.mrb[40].mxu1 }
 0x24a   :  { %v709_v20 = vadd.f32 %v1533_v18, %v2048_v10  ;;  %v703_v21 = vpop.f32.mrb[41].mxu1 }
 0x24b   :  { %v704_v22 = vadd.f32 %v2048_v10, %v703_v21  ;;  %1608 = vmatprep.mubr.f32.mxu0 %v764_v17 }
 0x24c   :  { %1609 = vmatmul.mubr.f32.gmra.mrb[38].mxu0 %v765_v19  ;;  %v767_v25 = vmax.f32 %v709_v20, 0.0 }
 0x24d   :  { %v766_v23 = vmax.f32 %v704_v22, 0.0  ;;  %v1536_v24 = vpop.f32.mrb[42].mxu1 }
 0x24e   :  { %v719_v26 = vadd.f32 %v1536_v24, %v2048_v10  ;;  %v713_v27 = vpop.f32.mrb[43].mxu1 }
 0x24f   :  { %v714_v28 = vadd.f32 %v2048_v10, %v713_v27  ;;  %1611 = vmatprep.mubr.f32.mxu0 %v766_v23 }
 0x250   :  { %1612 = vmatmul.mubr.f32.gmra.mrb[40].mxu0 %v767_v25  ;;  %v769_v31 = vmax.f32 %v719_v26, 0.0 }
 0x251   :  { %v768_v29 = vmax.f32 %v714_v28, 0.0  ;;  %v1539_v30 = vpop.f32.mrb[44].mxu1 }
 0x252   :  { %v729_v32 = vadd.f32 %v1539_v30, %v2048_v10  ;;  %v723_v33 = vpop.f32.mrb[45].mxu1 }
 0x253   :  { %v724_v34 = vadd.f32 %v2048_v10, %v723_v33  ;;  %1614 = vmatprep.mubr.f32.mxu0 %v768_v29 }
 0x254   :  { %1615 = vmatmul.mubr.f32.gmra.mrb[42].mxu0 %v769_v31  ;;  %v771_v38 = vmax.f32 %v729_v32, 0.0 }
 0x255   :  { %v770_v35 = vmax.f32 %v724_v34, 0.0  ;;  %v1542_v36 = vpop.f32.mrb[46].mxu1 }
 0x256   :  { %v739_v40 = vadd.f32 %v1542_v36, %v2048_v10  ;;  %v733_v41 = vpop.f32.mrb[47].mxu1 }
 0x257   :  { %v734_v43 = vadd.f32 %v2048_v10, %v733_v41  ;;  %1617 = vmatprep.mubr.f32.mxu0 %v770_v35 }
 0x258   :  { %1618 = vmatmul.mubr.f32.gmra.mrb[44].mxu0 %v771_v38  ;;  %v773_v42 = vmax.f32 %v739_v40, 0.0 }
 0x259   :  { %v772_v44 = vmax.f32 %v734_v43, 0.0 }
 0x25b   :  { %1620 = vmatprep.mubr.f32.mxu0 %v772_v44 }
 0x25c   :  { %1621 = vmatmul.mubr.f32.gmra.mrb[46].mxu0 %v773_v42 }
 0x2f3   :  { %v1577_v47 = vpop.f32.mrb[16].mxu0 }
 0x2f4   :  { %v1154_v48 = vadd.f32 %v1577_v47, %v2085_v45  ;;  %v888_v49 = vpop.f32.mrb[17].mxu0 }
 0x2f5   :  { %v1153_v50 = vadd.f32 %v2085_v45, %v888_v49 }
 0x2f6   :  { %1186 = vst [vmem:[#allocation12 + $0x8] sm:$0xff] %v1154_v48 }
 0x2f7   :  { %1185 = vst [vmem:[#allocation12] sm:$0xff] %v1153_v50  ;;  %v1580_v10 = vpop.f32.mrb[18].mxu0 }
 0x2f8   :  { %v1156_v51 = vadd.f32 %v1580_v10, %v2085_v45  ;;  %v898_v39 = vpop.f32.mrb[19].mxu0 }
 0x2f9   :  { %v1155_v52 = vadd.f32 %v2085_v45, %v898_v39 }
 0x2fa   :  { %1188 = vst [vmem:[#allocation12 + $0x18] sm:$0xff] %v1156_v51 }
 0x2fb   :  { %1187 = vst [vmem:[#allocation12 + $0x10] sm:$0xff] %v1155_v52  ;;  %v1583_v53 = vpop.f32.mrb[20].mxu0 }
 0x2fc   :  { %v1158_v55 = vadd.f32 %v1583_v53, %v2085_v45  ;;  %v908_v56 = vpop.f32.mrb[21].mxu0 }
 0x2fd   :  { %v1157_v46 = vadd.f32 %v2085_v45, %v908_v56 }
 0x2fe   :  { %1190 = vst [vmem:[#allocation12 + $0x28] sm:$0xff] %v1158_v55 }
 0x2ff   :  { %1189 = vst [vmem:[#allocation12 + $0x20] sm:$0xff] %v1157_v46  ;;  %v1586_v57 = vpop.f32.mrb[22].mxu0 }
 0x300   :  { %v1160_v58 = vadd.f32 %v1586_v57, %v2085_v45  ;;  %v918_v59 = vpop.f32.mrb[23].mxu0 }
 0x301   :  { %v1159_v54 = vadd.f32 %v2085_v45, %v918_v59 }
 0x302   :  { %1192 = vst [vmem:[#allocation12 + $0x38] sm:$0xff] %v1160_v58 }
 0x303   :  { %1191 = vst [vmem:[#allocation12 + $0x30] sm:$0xff] %v1159_v54  ;;  %v1589_v60 = vpop.f32.mrb[24].mxu0 }
 0x304   :  { %v1162_v61 = vadd.f32 %v1589_v60, %v2085_v45  ;;  %v928_v63 = vpop.f32.mrb[25].mxu0 }
 0x305   :  { %v1161_v62 = vadd.f32 %v2085_v45, %v928_v63 }
 0x306   :  { %1194 = vst [vmem:[#allocation12 + $0x48] sm:$0xff] %v1162_v61 }
 0x307   :  { %1193 = vst [vmem:[#allocation12 + $0x40] sm:$0xff] %v1161_v62  ;;  %v1592_v0 = vpop.f32.mrb[26].mxu0 }
 0x308   :  { %v1164_v1 = vadd.f32 %v1592_v0, %v2085_v45  ;;  %v938_v2 = vpop.f32.mrb[27].mxu0 }
 0x309   :  { %v1163_v3 = vadd.f32 %v2085_v45, %v938_v2 }
 0x30a   :  { %1196 = vst [vmem:[#allocation12 + $0x58] sm:$0xff] %v1164_v1 }
 0x30b   :  { %1195 = vst [vmem:[#allocation12 + $0x50] sm:$0xff] %v1163_v3  ;;  %v1595_v4 = vpop.f32.mrb[28].mxu0 }
 0x30c   :  { %v1166_v5 = vadd.f32 %v1595_v4, %v2085_v45  ;;  %v948_v6 = vpop.f32.mrb[29].mxu0 }
 0x30d   :  { %v1165_v7 = vadd.f32 %v2085_v45, %v948_v6 }
 0x30e   :  { %1198 = vst [vmem:[#allocation12 + $0x68] sm:$0xff] %v1166_v5 }
 0x30f   :  { %1197 = vst [vmem:[#allocation12 + $0x60] sm:$0xff] %v1165_v7  ;;  %v1598_v8 = vpop.f32.mrb[30].mxu0 }
 0x310   :  { %v1168_v9 = vadd.f32 %v1598_v8, %v2085_v45  ;;  %v958_v11 = vpop.f32.mrb[31].mxu0 }
 0x311   :  { %v1167_v12 = vadd.f32 %v2085_v45, %v958_v11 }
 0x312   :  { %1200 = vst [vmem:[#allocation12 + $0x78] sm:$0xff] %v1168_v9 }
 0x313   :  { %1199 = vst [vmem:[#allocation12 + $0x70] sm:$0xff] %v1167_v12  ;;  %v1601_v13 = vpop.f32.mrb[32].mxu0 }
 0x314   :  { %v1170_v37 = vadd.f32 %v1601_v13, %v2085_v45  ;;  %v968_v14 = vpop.f32.mrb[33].mxu0 }
 0x315   :  { %v1169_v15 = vadd.f32 %v2085_v45, %v968_v14 }
 0x316   :  { %1202 = vst [vmem:[#allocation12 + $0x88] sm:$0xff] %v1170_v37 }
 0x317   :  { %1201 = vst [vmem:[#allocation12 + $0x80] sm:$0xff] %v1169_v15  ;;  %v1604_v16 = vpop.f32.mrb[34].mxu0 }
 0x318   :  { %v1172_v17 = vadd.f32 %v1604_v16, %v2085_v45  ;;  %v978_v18 = vpop.f32.mrb[35].mxu0 }
 0x319   :  { %v1171_v19 = vadd.f32 %v2085_v45, %v978_v18 }
 0x31a   :  { %1204 = vst [vmem:[#allocation12 + $0x98] sm:$0xff] %v1172_v17 }
 0x31b   :  { %1203 = vst [vmem:[#allocation12 + $0x90] sm:$0xff] %v1171_v19  ;;  %v1607_v20 = vpop.f32.mrb[36].mxu0 }
 0x31c   :  { %v1174_v21 = vadd.f32 %v1607_v20, %v2085_v45  ;;  %v988_v22 = vpop.f32.mrb[37].mxu0 }
 0x31d   :  { %v1173_v23 = vadd.f32 %v2085_v45, %v988_v22 }
 0x31e   :  { %1206 = vst [vmem:[#allocation12 + $0xa8] sm:$0xff] %v1174_v21 }
 0x31f   :  { %1205 = vst [vmem:[#allocation12 + $0xa0] sm:$0xff] %v1173_v23  ;;  %v1610_v24 = vpop.f32.mrb[38].mxu0 }
 0x320   :  { %v1176_v25 = vadd.f32 %v1610_v24, %v2085_v45  ;;  %v998_v26 = vpop.f32.mrb[39].mxu0 }
 0x321   :  { %v1175_v27 = vadd.f32 %v2085_v45, %v998_v26 }
 0x322   :  { %1208 = vst [vmem:[#allocation12 + $0xb8] sm:$0xff] %v1176_v25 }
 0x323   :  { %1207 = vst [vmem:[#allocation12 + $0xb0] sm:$0xff] %v1175_v27  ;;  %v1613_v28 = vpop.f32.mrb[40].mxu0 }
 0x324   :  { %v1178_v29 = vadd.f32 %v1613_v28, %v2085_v45  ;;  %v1008_v30 = vpop.f32.mrb[41].mxu0 }
 0x325   :  { %v1177_v31 = vadd.f32 %v2085_v45, %v1008_v30 }
 0x326   :  { %1210 = vst [vmem:[#allocation12 + $0xc8] sm:$0xff] %v1178_v29 }
 0x327   :  { %1209 = vst [vmem:[#allocation12 + $0xc0] sm:$0xff] %v1177_v31  ;;  %v1616_v32 = vpop.f32.mrb[42].mxu0 }
 0x328   :  { %v1180_v33 = vadd.f32 %v1616_v32, %v2085_v45  ;;  %v1018_v34 = vpop.f32.mrb[43].mxu0 }
 0x329   :  { %v1179_v35 = vadd.f32 %v2085_v45, %v1018_v34 }
 0x32a   :  { %1212 = vst [vmem:[#allocation12 + $0xd8] sm:$0xff] %v1180_v33 }
 0x32b   :  { %1211 = vst [vmem:[#allocation12 + $0xd0] sm:$0xff] %v1179_v35  ;;  %v1619_v36 = vpop.f32.mrb[44].mxu0 }
 0x32c   :  { %v1182_v38 = vadd.f32 %v1619_v36, %v2085_v45  ;;  %v1028_v40 = vpop.f32.mrb[45].mxu0 }
 0x32d   :  { %v1181_v41 = vadd.f32 %v2085_v45, %v1028_v40 }
 0x32e   :  { %1214 = vst [vmem:[#allocation12 + $0xe8] sm:$0xff] %v1182_v38 }
 0x32f   :  { %1213 = vst [vmem:[#allocation12 + $0xe0] sm:$0xff] %v1181_v41  ;;  %v1622_v43 = vpop.f32.mrb[46].mxu0 }
 0x330   :  { %v1184_v44 = vadd.f32 %v1622_v43, %v2085_v45  ;;  %v1038_v42 = vpop.f32.mrb[47].mxu0 }
 0x331   :  { %v1183_v47 = vadd.f32 %v2085_v45, %v1038_v42 }
 0x332   :  { %1216 = vst [vmem:[#allocation12 + $0xf8] sm:$0xff] %v1184_v44 }
 0x333   :  { %1215 = vst [vmem:[#allocation12 + $0xf0] sm:$0xff] %v1183_v47 }
 0x334   :  { %1841 = shalt.err (!%p1838_p8)
}
 0x335   :  { %s1842_s11 = scalar_lea.hbm %s2141_s7, 4096 }
 0x336   :  { %p1843_p9 = scmp.ne.s32.totalorder %s2141_s7, %s1842_s11  ;;  %p1846_p10 = scmp.lt.u32.totalorder %s1842_s11, %s2141_s7 }
 0x338   :  { %p1848_p11 = pnand %p1846_p10, %p1843_p9 }
 0x33a   :  { %1851 = shalt.err (!%p1848_p11)
}
 0x33b   :  { %1228 = dma.vmem_to_hbm [thread:$0]  %s1223_s30, 4096, %s2141_s7, [#allocation6], %s1862_s13, %s1862_s13, %s1863_s14  }
 0x33c   :  { %1858 = dma.done.wait [#allocation6], 4096  }
 0x33d   :  { %1859 = vsyncadd [#allocation6], 4294963200 }
 0x33e   :  { %1232 = vsyncpa [#allocation5], 1 }
 0x33f   :  { %1233 = vsyncpa [#allocation8], 1 }
 0x340   :  { %1234 = vsyncpa [#allocation11], 1 }
 0x341   :  { %1235 = vsyncpa [#allocation6], 1 }

</bundles_post_ra>
